<compile_context>
chip_gen: v7x
topology: tpu7x:2x2x1
jax: 0.10.0
libtpu: 0.0.40
codegen_flags: <defaults>
</compile_context>

<pallas_src>
import functools

import jax
import jax.numpy as jnp
from jax.experimental import pallas as pl
from jax.experimental.pallas import tpu as pltpu


def _ce_partial_sum_kernel(logits_ref, labels_ref, out_ref, *, ignore_lb, S, TS):
    """One (image, spatial-tile) grid step.

    logits_ref: (1, C, TS) native dtype  -> cast to f32 in-kernel.
    labels_ref: (1, 1, TS) integer labels.
    out_ref:    (1, 1, 1, 1) f32 partial sum owned exclusively by this step.
    """
    x = logits_ref[0].astype(jnp.float32)          # (C, TS), classes on sublanes
    lab = labels_ref[0].astype(jnp.int32)          # (1, TS)

    # Numerically stable CE with the max shift folded:
    #   lse - x[lab] = log(sum(exp(x - m))) - (x[lab] - m)
    m = jnp.max(x, axis=0, keepdims=True)                               # (1, TS)
    t = x - m                                                           # (C, TS)
    sum_exp = jnp.sum(jnp.exp(t), axis=0, keepdims=True)                # (1, TS)
    cls = jax.lax.broadcasted_iota(jnp.int32, t.shape, 0)               # (C, TS)
    t_lab = jnp.sum(jnp.where(cls == lab, t, 0.0), axis=0, keepdims=True)
    per_pixel = jnp.log(sum_exp) - t_lab                                # (1, TS)

    # Mask ignore_index pixels and tail lanes past the true spatial extent
    # (grid uses cdiv(S, TS); padded lanes contribute 0 to the numerator).
    lane = jax.lax.broadcasted_iota(jnp.int32, (1, TS), 1)
    in_range = (pl.program_id(1) * TS + lane) < S
    valid = jnp.logical_and(lab != ignore_lb, in_range)

    out_ref[0, 0] = jnp.sum(jnp.where(valid, per_pixel, 0.0),
                            axis=1, keepdims=True)                      # (1, 1)


def _choose_spatial_tile(S, C, itemsize):
    """Lane tile size: ~4 MiB of native-dtype logits per block, >= ~4 steps per
    image when the image is big enough, always a multiple of 128 (or the full
    spatial extent for tiny images)."""
    if S <= 256:
        return S
    target_bytes = 4 << 20                                   # ~4 MiB logits/block
    lanes_budget = max(128, ((target_bytes // (max(C, 1) * itemsize)) // 128) * 128)
    depth_cap = max(128, ((S // 4) // 128) * 128)            # pipeline / 2-TC depth
    full_cap = max(128, (S // 128) * 128)
    return min(lanes_budget, depth_cap, full_cap)


@functools.partial(jax.jit, static_argnames=("ignore_lb",))
def normal_loss(logits, labels, ignore_lb=255):
    """NormalLoss.forward: mean over N*H*W of CE(logits, labels, ignore_lb)."""
    N, C, H, W = logits.shape
    S = H * W
    TS = _choose_spatial_tile(S, C, jnp.dtype(logits.dtype).itemsize)
    num_tiles = pl.cdiv(S, TS)

    # Keep native dtypes through the DMA (no wrapper astype copies).
    logits_r = logits.reshape(N, C, S)
    labels_r = labels.reshape(N, 1, S)

    partial_sums = pl.pallas_call(
        functools.partial(_ce_partial_sum_kernel,
                          ignore_lb=ignore_lb, S=S, TS=TS),
        grid=(N, num_tiles),
        in_specs=[
            pl.BlockSpec((1, C, TS), lambda n, s: (n, 0, s)),
            pl.BlockSpec((1, 1, TS), lambda n, s: (n, 0, s)),
        ],
        out_specs=pl.BlockSpec((1, 1, 1, 1), lambda n, s: (n, s, 0, 0)),
        out_shape=jax.ShapeDtypeStruct((N, num_tiles, 1, 1), jnp.float32),
        compiler_params=pltpu.CompilerParams(
            dimension_semantics=("parallel", "parallel"),
            vmem_limit_bytes=40 * 1024 * 1024),
    )(logits_r, labels_r)

    # torch.mean over every position: ignored pixels contribute 0 to the sum
    # but are still counted in the denominator (reduction='none' + mean).
    return jnp.sum(partial_sums) / (N * S)


def _ref_normal_loss(logits, labels, ignore_lb=255):
    """Pure-JAX reference for validation."""
    x = logits.astype(jnp.float32)
    lse = jax.scipy.special.logsumexp(x, axis=1)                 # (N, H, W)
    safe = jnp.where(labels == ignore_lb, 0, labels).astype(jnp.int32)
    picked = jnp.take_along_axis(x, safe[:, None, :, :], axis=1)[:, 0]
    loss = jnp.where(labels == ignore_lb, 0.0, lse - picked)
    return jnp.mean(loss)


if __name__ == "__main__":
    key = jax.random.PRNGKey(0)
    k_logit, k_label, k_ign = jax.random.split(key, 3)
    N, C, H, W = 2, 4, 16, 16
    logits = jax.random.normal(k_logit, (N, C, H, W), dtype=jnp.float32)
    labels = jax.random.randint(k_label, (N, H, W), 0, C, dtype=jnp.int32)
    # Sprinkle some ignore_index=255 pixels, as a segmentation label map would.
    labels = jnp.where(jax.random.uniform(k_ign, (N, H, W)) < 0.15, 255, labels)

    loss = jax.block_until_ready(normal_loss(logits, labels))

    ref = _ref_normal_loss(logits, labels)
    assert jnp.allclose(loss, ref, rtol=1e-5, atol=1e-5), (loss, ref)

    print("KERNEL_OK")
</pallas_src>

<mosaic_0001>
module attributes {stable_mosaic.version = 11 : i64} {
  func.func @_ce_partial_sum_kernel(%arg0: i32, %arg1: i32, %arg2: memref<1x4x256xf32, #tpu.memory_space<vmem>>, %arg3: memref<1x1x256xi32, #tpu.memory_space<vmem>>, %arg4: memref<1x1x1x1xf32, #tpu.memory_space<vmem>>) attributes {dimension_semantics = [#tpu.dimension_semantics<parallel>, #tpu.dimension_semantics<parallel>], iteration_bounds = array<i64: 2, 1>, scalar_prefetch = 0 : i64, scratch_operands = 0 : i64, tpu.core_type = #tpu.core_type<tc>, window_params = [{transform_indices = @transform_0, window_bounds = array<i64: 1, 4, 256>}, {transform_indices = @transform_1, window_bounds = array<i64: 1, 1, 256>}, {transform_indices = @transform_2, window_bounds = array<i64: 1, 1, 1, 1>}]} {
    %c0 = arith.constant 0 : index
    %c0_0 = arith.constant 0 : index
    %c0_1 = arith.constant 0 : index
    %0 = vector.load %arg2[%c0, %c0_0, %c0_1] : memref<1x4x256xf32, #tpu.memory_space<vmem>>, vector<1x4x256xf32>
    %1 = vector.shape_cast %0 : vector<1x4x256xf32> to vector<4x256xf32>
    %c0_2 = arith.constant 0 : index
    %c0_3 = arith.constant 0 : index
    %c0_4 = arith.constant 0 : index
    %2 = vector.load %arg3[%c0_2, %c0_3, %c0_4] : memref<1x1x256xi32, #tpu.memory_space<vmem>>, vector<1x1x256xi32>
    %3 = vector.shape_cast %2 : vector<1x1x256xi32> to vector<1x256xi32>
    %cst = arith.constant dense<0xFF800000> : vector<256xf32>
    %4 = vector.multi_reduction <maximumf>, %1, %cst [0] : vector<4x256xf32> to vector<256xf32>
    %5 = vector.shape_cast %4 : vector<256xf32> to vector<1x256xf32>
    %6 = vector.broadcast %5 : vector<1x256xf32> to vector<4x256xf32>
    %7 = arith.subf %1, %6 : vector<4x256xf32>
    %8 = math.exp %7 : vector<4x256xf32>
    %cst_5 = arith.constant dense<0.000000e+00> : vector<256xf32>
    %9 = vector.multi_reduction <add>, %8, %cst_5 [0] : vector<4x256xf32> to vector<256xf32>
    %10 = vector.shape_cast %9 : vector<256xf32> to vector<1x256xf32>
    %11 = tpu.iota {dimensions = array<i32: 0>} : vector<4x256xi32>
    %12 = vector.broadcast %3 : vector<1x256xi32> to vector<4x256xi32>
    %13 = arith.cmpi eq, %11, %12 : vector<4x256xi32>
    %cst_6 = arith.constant 0.000000e+00 : f32
    %14 = vector.broadcast %cst_6 : f32 to vector<4x256xf32>
    %15 = arith.select %13, %7, %14 : vector<4x256xi1>, vector<4x256xf32>
    %cst_7 = arith.constant dense<0.000000e+00> : vector<256xf32>
    %16 = vector.multi_reduction <add>, %15, %cst_7 [0] : vector<4x256xf32> to vector<256xf32>
    %17 = vector.shape_cast %16 : vector<256xf32> to vector<1x256xf32>
    %18 = math.log %10 : vector<1x256xf32>
    %19 = arith.subf %18, %17 : vector<1x256xf32>
    %20 = tpu.iota {dimensions = array<i32: 1>} : vector<1x256xi32>
    %c256_i32 = arith.constant 256 : i32
    %21 = arith.muli %arg1, %c256_i32 : i32
    %22 = vector.broadcast %21 : i32 to vector<1x256xi32>
    %23 = arith.addi %22, %20 : vector<1x256xi32>
    %c256_i32_8 = arith.constant 256 : i32
    %24 = vector.broadcast %c256_i32_8 : i32 to vector<1x256xi32>
    %25 = arith.cmpi slt, %23, %24 : vector<1x256xi32>
    %c255_i32 = arith.constant 255 : i32
    %26 = vector.broadcast %c255_i32 : i32 to vector<1x256xi32>
    %27 = arith.cmpi ne, %3, %26 : vector<1x256xi32>
    %28 = arith.andi %27, %25 : vector<1x256xi1>
    %cst_9 = arith.constant 0.000000e+00 : f32
    %29 = vector.broadcast %cst_9 : f32 to vector<1x256xf32>
    %30 = arith.select %28, %19, %29 : vector<1x256xi1>, vector<1x256xf32>
    %cst_10 = arith.constant dense<0.000000e+00> : vector<1xf32>
    %31 = vector.multi_reduction <add>, %30, %cst_10 [1] : vector<1x256xf32> to vector<1xf32>
    %32 = vector.shape_cast %31 : vector<1xf32> to vector<1x1xf32>
    %c0_11 = arith.constant 0 : index
    %c0_12 = arith.constant 0 : index
    %c0_13 = arith.constant 0 : index
    %c0_14 = arith.constant 0 : index
    %33 = vector.load %arg4[%c0_11, %c0_12, %c0_13, %c0_14] : memref<1x1x1x1xf32, #tpu.memory_space<vmem>>, vector<1x1x1x1xf32>
    %34 = vector.shape_cast %33 : vector<1x1x1x1xf32> to vector<1x1xf32>
    %35 = vector.shape_cast %32 : vector<1x1xf32> to vector<1x1x1x1xf32>
    tpu.vector_store %arg4[%c0_11, %c0_12, %c0_13, %c0_14], %35 {strides = array<i32>} : memref<1x1x1x1xf32, #tpu.memory_space<vmem>>, vector<1x1x1x1xf32>,
    return
  }
  func.func @transform_0(%arg0: i32, %arg1: i32) -> (i32, i32, i32) {
    %c0_i32 = arith.constant 0 : i32
    %c0_i32_0 = arith.constant 0 : i32
    return %arg0, %c0_i32, %arg1 : i32, i32, i32
  }
  func.func @transform_1(%arg0: i32, %arg1: i32) -> (i32, i32, i32) {
    %c0_i32 = arith.constant 0 : i32
    %c0_i32_0 = arith.constant 0 : i32
    return %arg0, %c0_i32, %arg1 : i32, i32, i32
  }
  func.func @transform_2(%arg0: i32, %arg1: i32) -> (i32, i32, i32, i32) {
    %c0_i32 = arith.constant 0 : i32
    %c0_i32_0 = arith.constant 0 : i32
    %c0_i32_1 = arith.constant 0 : i32
    return %arg0, %arg1, %c0_i32, %c0_i32_0 : i32, i32, i32, i32
  }
}

</mosaic_0001>

<bundles_post_ra>
// kernel: normal_loss.1
= control target key start
LH: loop header
LB: loop body
LE: loop exit
PB: predicated region body
PF: predicated region fallthrough
CT: control target
= control target key end

     0   :  { %s528_s9 = smov 0   ;;  %s530_s10 = smov 0   ;;  %s590_s0 = inlined_call_operand.vmem [shape: f32[2,4,256], index: 0, kind: input, shape index: {}]   ;;  %s591_s1 = inlined_call_operand.vmem [shape: s32[2,1,256], index: 1, kind: input, shape index: {}]   ;;  %s592_s2 = inlined_call_operand.vmem [shape: f32[2,1,1,1], index: 2, kind: output, shape index: {}]  }
   0x1   :  { %s532_s11 = smov 0  }
   0x2 LB: > { %s24_s12 = sadd.s32 1, %s505_s10  ;;  %p447_p0 = scmp.ge.s32.totalorder %s509_s11, 1  ;;  %s509_s11 = sphi %s532_s11, %s12_s11   ;;  %s505_s10 = sphi %s530_s10, %s594_s10   ;;  %s501_s9 = sphi %s528_s9, %s593_s9  }
   0x3   : > { %p26_p1 = scmp.ge.s32.totalorder %s24_s12, 2  ;;  %p149_p2 = scmp.lt.s32.totalorder %s509_s11, 3 }
   0x5   : > { %s596_s12 = smov (%p26_p1, %s24_s12), 0  ;;  %p150_p3 = pnand %p447_p0, %p149_p2 }
   0x6   : > { %p185_p4 = scmp.lt.s32.totalorder (!%p150_p3), %s501_s9, 1  ;;  %vm214_vm0 = vcmask (!%p150_p3), 1043456   ;;  %v253_v13 = vlaneseq (!%p150_p3)  ;;  %v511_v49 = vmov (!%p150_p3), 1966171168   ;;  %v512_v59 = vmov (!%p150_p3), 1  }
   0x7   : > { %153 = sbr.rel (%p150_p3) target bundleno = 235 (0xeb), region = 28  ;;  %v304_v50 = vunpack.c.l.s4 (!%p150_p3), %v511_v49  ;;  %v302_v60 = vcombine.low (!%p150_p3), %v512_v59, %v512_v59  ;;  %vm349_vm6 = vcmask (!%p150_p3), 1040384   ;;  %vm355_vm7 = vcmask (!%p150_p3), 0  }
   0x8   : > { %v555_v17 = vshrl.u32 (!%p150_p3), %v253_v13, 7 }
   0x9   : > { %v305_v56 = vunpack.c.0.s8 (!%p150_p3), %v304_v50 }
   0xa   : > { %v257_v20 = vsub.s32 (!%p150_p3), 0, %v555_v17  ;;  %v261_v23 = vsub.s32 (!%p150_p3), 1, %v555_v17 }
   0xb   : > { %v308_v61 = vsub.s32 (!%p150_p3), %v305_v56, %v555_v17 }
   0xe   : > { %s598_s9 = smov (!%p185_p4, %s501_s9), 1 }
   0xf   : > { %s453_s13 = sshll.u32 %s598_s9, 3  ;;  %s450_s17 = sshll.u32 %s598_s9, 1 }
  0x10   : > { %s192_s16 = scalar_lea.vmem %s590_s0, %s453_s13  ;;  %s201_s20 = scalar_lea.vmem %s591_s1, %s450_s17 }
  0x11   : > { %v209_v0 = vld [vmem:[%s192_s16] sm:$0xff]  ;;  %s208_s23 = scalar_lea.vmem %s592_s2, %s598_s9 }
  0x12   : > { %v212_v1 = vcombine.high %v209_v0, %v209_v0  ;;  %v215_v2 = vsel %vm214_vm0, %v209_v0, -inf  ;;  %v210_v21 = vld [vmem:[%s201_s20] sm:$0x3] }
  0x13   : > { %v216_v3 = vrot.slane %v215_v2, 4  ;;  %v258_v24 = vrot.slane %v210_v21, %v257_v20  ;;  %v262_v25 = vrot.slane %v210_v21, %v261_v23  ;;  %vm299_vm3 = vcmp.ne.s32.totalorder %v210_v21, 255 }
  0x14   : > { %v222_v4 = vsel %vm214_vm0, %v212_v1, -inf }
  0x15   : > { %v217_v5 = vmax.f32 %v215_v2, %v216_v3  ;;  %v223_v6 = vrot.slane %v222_v4, 4  ;;  %vm263_vm1 = vcmp.eq.s32.totalorder %v555_v17, %v258_v24  ;;  %vm264_vm2 = vcmp.eq.s32.totalorder %v555_v17, %v262_v25 }
  0x17   : > { %v218_v7 = vrot.slane %v217_v5, 2  ;;  %v224_v8 = vmax.f32 %v222_v4, %v223_v6 }
  0x19   : > { %v219_v9 = vmax.f32 %v217_v5, %v218_v7  ;;  %v225_v10 = vrot.slane %v224_v8, 2 }
  0x1b   : > { %v220_v11 = vrot.slane %v219_v9, 1  ;;  %v226_v12 = vmax.f32 %v224_v8, %v225_v10 }
  0x1d   : > { %v221_v14 = vmax.f32 %v219_v9, %v220_v11  ;;  %v227_v15 = vrot.slane %v226_v12, 1 }
  0x1f   : > { %v228_v16 = vmax.f32 %v226_v12, %v227_v15 }
  0x21   : > { %v231_v18 = vcombine.low %v221_v14, %v228_v16 }
  0x23   : > { %v233_v19 = vsub.f32 %v209_v0, %v231_v18  ;;  %v309_v0 = vrot.slane %v302_v60, %v308_v61 }
  0x25   : > { %v234_v22 = vmul.f32 1.442695, %v233_v19  ;;  %v266_v26 = vcombine.high %v233_v19, %v233_v19  ;;  %v268_v27 = vsel %vm263_vm1, %v233_v19, 0.0  ;;  %v316_v7 = vrot.slane %v309_v0, %v308_v61 }
  0x26   : > { %v270_v30 = vsel %vm214_vm0, %v268_v27, 0.0 }
  0x27   : > { %481 = vpow2.f32 %v234_v22  ;;  %v269_v28 = vsel %vm264_vm2, %v266_v26, 0.0  ;;  %v271_v36 = vrot.slane %v270_v30, 4  ;;  %vm317_vm4 = vcmp.ne.s32.totalorder %v316_v7, 0 }
  0x28   : > { %v277_v34 = vsel %vm214_vm0, %v269_v28, 0.0  ;;  %vm318_vm5 = vmand %vm299_vm3, %vm317_vm4 }
  0x29   : > { %v278_v39 = vrot.slane %v277_v34, 4  ;;  %v272_v42 = vadd.f32 %v271_v36, %v270_v30 }
  0x2b   : > { %v279_v45 = vadd.f32 %v278_v39, %v277_v34  ;;  %v273_v48 = vrot.slane %v272_v42, 2 }
  0x2d   : > { %v280_v53 = vrot.slane %v279_v45, 2  ;;  %v274_v55 = vadd.f32 %v273_v48, %v272_v42 }
  0x2f   : > { %v281_v57 = vadd.f32 %v280_v53, %v279_v45  ;;  %v275_v58 = vrot.slane %v274_v55, 1 }
  0x31   : > { %v482_v29 = vpop.eup %481  ;;  %v282_v62 = vrot.slane %v281_v57, 1  ;;  %v276_v63 = vadd.f32 %v275_v58, %v274_v55 }
  0x32   : > { %v237_v31 = vcombine.high %v482_v29, %v482_v29  ;;  %v239_v32 = vsel %vm214_vm0, %v482_v29, 0.0 }
  0x33   : > { %v240_v33 = vrot.slane %v239_v32, 4  ;;  %v283_v2 = vadd.f32 %v282_v62, %v281_v57 }
  0x34   : > { %v246_v35 = vsel %vm214_vm0, %v237_v31, 0.0 }
  0x35   : > { %v241_v37 = vadd.f32 %v240_v33, %v239_v32  ;;  %v247_v38 = vrot.slane %v246_v35, 4 }
  0x37   : > { %v242_v40 = vrot.slane %v241_v37, 2  ;;  %v248_v41 = vadd.f32 %v247_v38, %v246_v35 }
  0x39   : > { %v243_v43 = vadd.f32 %v242_v40, %v241_v37  ;;  %v249_v44 = vrot.slane %v248_v41, 2 }
  0x3b   : > { %v244_v46 = vrot.slane %v243_v43, 1  ;;  %v250_v47 = vadd.f32 %v249_v44, %v248_v41 }
  0x3d   : > { %v245_v51 = vadd.f32 %v244_v46, %v243_v43  ;;  %v251_v52 = vrot.slane %v250_v47, 1 }
  0x3f   : > { %v252_v54 = vadd.f32 %v251_v52, %v250_v47  ;;  %483 = vlog2.f32 %v245_v51 }
  0x41   : > { %485 = vlog2.f32 %v252_v54 }
  0x49   : > { %v484_v1 = vpop.eup %483 }
  0x4a   : > { %v285_v3 = vmul.f32 0.6931472, %v484_v1 }
  0x4b   : > { %v486_v4 = vpop.eup %485 }
  0x4c   : > { %v287_v5 = vmul.f32 0.6931472, %v486_v4  ;;  %v288_v6 = vsub.f32 %v285_v3, %v276_v63 }
  0x4e   : > { %v289_v8 = vsub.f32 %v287_v5, %v283_v2 }
  0x50   : > { %v321_v9 = vcombine.low %v288_v6, %v289_v8 }
  0x52   : > { %v328_v10 = vrot.slane %v321_v9, %v308_v61 }
  0x54   : > { %v335_v11 = vrot.slane %v328_v10, %v308_v61 }
  0x56   : > { %v337_v12 = vsel %vm318_vm5, %v335_v11, 0.0 }
  0x57   : > { %v342_v13 = vrot.slane %v337_v12, %v257_v20  ;;  %v346_v14 = vrot.slane %v337_v12, %v261_v23 }
  0x59   : > { %v350_v15 = vsel %vm349_vm6, %v342_v13, 0.0  ;;  %v351_v16 = vsel %vm349_vm6, %v346_v14, 0.0 }
  0x5a   : > { %v352_v18 = vadd.f32 %v351_v16, %v350_v15 }
  0x5c   : > { %353 = vadd.xlane.f32.xlu0 %v352_v18 }
  0xe9   : > { %v354_v19 = vpop.xlane.xlu0 %353 }
  0xea   : > { %356 = vst.msk [vmem:[%s208_s23] sm:$0x1] %vm355_vm7, %v354_v19 }
  0xeb PF: > { %s12_s11 = sadd.s32 1, %s509_s11   ;;  %s593_s9 = smov %s505_s10 }
  0xec   : > { %p9_p5 = scmp.ge.s32.totalorder %s12_s11, 4   ;;  %s594_s10 = smov %s596_s12 }
  0xee   :  { %11 = sbr.rel (!%p9_p5) target bundleno = 2 (0x2), region = 61 }

</bundles_post_ra>
